<compile_context>
chip_gen: v7x
topology: tpu7x:2x2x1
jax: 0.10.0
libtpu: 0.0.40
codegen_flags: <defaults>
</compile_context>

<pallas_src>
import math

import jax
import jax.numpy as jnp
from jax.experimental import pallas as pl
from jax.experimental.pallas import tpu as pltpu


def _round_up(x, m):
    return (x + m - 1) // m * m


def _gelu_exact(x):
    # PyTorch nn.GELU() default = exact erf-based GELU (kept for fidelity).
    return 0.5 * x * (1.0 + jax.lax.erf(x * (1.0 / math.sqrt(2.0))))


def mlp_kernel(x_ref, w1_ref, b1_ref, w2_ref, b2_ref, o_ref):
    # x tile kept in f32 for the epilogue / residual.
    x = x_ref[...].astype(jnp.float32)

    # Linear 1 (bf16 operands on the MXU, f32 accumulation) + bias + GELU.
    h = jnp.dot(x.astype(jnp.bfloat16), w1_ref[...],
                preferred_element_type=jnp.float32) + b1_ref[...]
    h = _gelu_exact(h)
    # TODO(synk): training-mode dropout (would use pltpu.prng_seed / prng_random_bits).

    # Linear 2 + bias + GELU.
    y = jnp.dot(h.astype(jnp.bfloat16), w2_ref[...],
                preferred_element_type=jnp.float32) + b2_ref[...]
    y = _gelu_exact(y)

    # Residual.
    o_ref[...] = (y + x).astype(o_ref.dtype)


def mlp_forward(x, w1, b1, w2, b2, *, tm=512):
    """x: [M, vec_dim]; w1: [vec_dim, hidden]; b1: [hidden] or [1, hidden];
    w2: [hidden, vec_dim]; b2: [vec_dim] or [1, vec_dim]. Returns [M, vec_dim]."""
    M, D = x.shape
    H = w1.shape[1]

    b1 = jnp.reshape(b1, (1, H))
    b2 = jnp.reshape(b2, (1, D))

    # Lane-dense padding of the feature dims to multiples of 128.
    Dp = _round_up(D, 128)
    Hp = _round_up(H, 128)

    # M tiling: weights stay resident, x/out tiles are pipelined over the grid.
    TM = min(tm, _round_up(M, 8))
    Mp = _round_up(M, TM)

    xp = jnp.pad(x, ((0, Mp - M), (0, Dp - D)))
    w1p = jnp.pad(w1, ((0, Dp - D), (0, Hp - H))).astype(jnp.bfloat16)
    b1p = jnp.pad(b1, ((0, 0), (0, Hp - H))).astype(jnp.float32)
    w2p = jnp.pad(w2, ((0, Hp - H), (0, Dp - D))).astype(jnp.bfloat16)
    b2p = jnp.pad(b2, ((0, 0), (0, Dp - D))).astype(jnp.float32)

    grid = (Mp // TM,)

    # VMEM budget estimate (capped against v7x's 64 MiB per-TC VMEM):
    # bf16 resident weights + f32 biases + double-buffered f32 x/out tiles
    # + f32 hidden tile, with ~50% headroom.
    vmem_est = int(1.5 * (
        2 * (Dp * Hp + Hp * Dp)      # bf16 weights (resident)
        + 4 * (Hp + Dp)              # f32 biases
        + 2 * 2 * TM * Dp * 4        # x + out tiles, double-buffered, f32
        + TM * Hp * 4                # hidden activation tile
    ))
    vmem_limit = max(32 << 20, min(vmem_est, 64 << 20))
    # TODO(synk): if the resident weights ever exceed the VMEM budget, add a
    # trailing "arbitrary" grid axis over H and accumulate y into a pltpu.VMEM scratch.

    cost = pl.CostEstimate(
        flops=2 * Mp * (Dp * Hp + Hp * Dp),
        transcendentals=Mp * (Hp + Dp),
        bytes_accessed=(xp.size * 4 + w1p.size * 2 + w2p.size * 2
                        + b1p.size * 4 + b2p.size * 4 + Mp * Dp * 4),
    )

    out = pl.pallas_call(
        mlp_kernel,
        out_shape=jax.ShapeDtypeStruct((Mp, Dp), x.dtype),
        grid=grid,
        in_specs=[
            pl.BlockSpec((TM, Dp), lambda i: (i, 0)),   # x tile (pipelined)
            pl.BlockSpec((Dp, Hp), lambda i: (0, 0)),   # W1 (resident)
            pl.BlockSpec((1, Hp), lambda i: (0, 0)),    # b1 (resident)
            pl.BlockSpec((Hp, Dp), lambda i: (0, 0)),   # W2 (resident)
            pl.BlockSpec((1, Dp), lambda i: (0, 0)),    # b2 (resident)
        ],
        out_specs=pl.BlockSpec((TM, Dp), lambda i: (i, 0)),
        compiler_params=pltpu.CompilerParams(
            # M tiles are independent -> shard across both TensorCores on v7x.
            dimension_semantics=("parallel",),
            vmem_limit_bytes=vmem_limit,
        ),
        cost_estimate=cost,
    )(xp, w1p, b1p, w2p, b2p)

    return out[:M, :D]


if __name__ == "__main__":
    # Small shapes consistent with the module: tokens M = batch*seq = 2*8 = 16,
    # vec_dim = 32, hidden_dim = 64, dropout ignored at inference.
    batch, seq, vec_dim, hidden_dim = 2, 8, 32, 64
    M = batch * seq

    key = jax.random.PRNGKey(0)
    kx, kw1, kb1, kw2, kb2 = jax.random.split(key, 5)

    x3 = jax.random.normal(kx, (batch, seq, vec_dim), dtype=jnp.float32)

    # Deterministic synthetic params (PyTorch Linear-like init scale).
    lim1 = 1.0 / math.sqrt(vec_dim)
    lim2 = 1.0 / math.sqrt(hidden_dim)
    w1 = jax.random.uniform(kw1, (vec_dim, hidden_dim), jnp.float32, -lim1, lim1)
    b1 = jax.random.uniform(kb1, (hidden_dim,), jnp.float32, -lim1, lim1)
    w2 = jax.random.uniform(kw2, (hidden_dim, vec_dim), jnp.float32, -lim2, lim2)
    b2 = jax.random.uniform(kb2, (vec_dim,), jnp.float32, -lim2, lim2)

    x = x3.reshape(M, vec_dim)
    out = mlp_forward(x, w1, b1, w2, b2)
    out = jax.block_until_ready(out).reshape(batch, seq, vec_dim)

    # Reference 1: identical bf16-matmul / f32-epilogue math (tight check).
    def ref_bf16(xf):
        h = _gelu_exact(jnp.dot(xf.astype(jnp.bfloat16), w1.astype(jnp.bfloat16),
                                preferred_element_type=jnp.float32) + b1[None, :])
        y = _gelu_exact(jnp.dot(h.astype(jnp.bfloat16), w2.astype(jnp.bfloat16),
                                preferred_element_type=jnp.float32) + b2[None, :])
        return y + xf

    # Reference 2: full-f32 PyTorch-equivalent math (loose check, bf16 matmul error).
    def ref_f32(xf):
        h = _gelu_exact(xf @ w1 + b1[None, :])
        y = _gelu_exact(h @ w2 + b2[None, :])
        return y + xf

    r_bf16 = ref_bf16(x).reshape(batch, seq, vec_dim)
    r_f32 = ref_f32(x).reshape(batch, seq, vec_dim)

    assert out.shape == (batch, seq, vec_dim)
    assert jnp.allclose(out, r_bf16, atol=1e-4, rtol=1e-4), "mismatch vs bf16 reference"
    assert jnp.allclose(out, r_f32, atol=5e-2, rtol=5e-2), "mismatch vs f32 reference"

    print("KERNEL_OK")
</pallas_src>

<mosaic_0001>
module attributes {stable_mosaic.version = 11 : i64} {
  func.func @mlp_kernel(%arg0: i32, %arg1: memref<16x128xf32, #tpu.memory_space<vmem>>, %arg2: memref<128x128xbf16, #tpu.memory_space<vmem>>, %arg3: memref<1x128xf32, #tpu.memory_space<vmem>>, %arg4: memref<128x128xbf16, #tpu.memory_space<vmem>>, %arg5: memref<1x128xf32, #tpu.memory_space<vmem>>, %arg6: memref<16x128xf32, #tpu.memory_space<vmem>>) attributes {dimension_semantics = [#tpu.dimension_semantics<parallel>], iteration_bounds = array<i64: 1>, scalar_prefetch = 0 : i64, scratch_operands = 0 : i64, tpu.core_type = #tpu.core_type<tc>, window_params = [{transform_indices = @transform_0, window_bounds = array<i64: 16, 128>}, {pipeline_mode = #tpu.pipeline_mode<synchronous>, transform_indices = @transform_1, window_bounds = array<i64: 128, 128>}, {pipeline_mode = #tpu.pipeline_mode<synchronous>, transform_indices = @transform_2, window_bounds = array<i64: 1, 128>}, {pipeline_mode = #tpu.pipeline_mode<synchronous>, transform_indices = @transform_3, window_bounds = array<i64: 128, 128>}, {pipeline_mode = #tpu.pipeline_mode<synchronous>, transform_indices = @transform_4, window_bounds = array<i64: 1, 128>}, {transform_indices = @transform_5, window_bounds = array<i64: 16, 128>}]} {
    %c0 = arith.constant 0 : index
    %c0_0 = arith.constant 0 : index
    %0 = vector.load %arg1[%c0, %c0_0] : memref<16x128xf32, #tpu.memory_space<vmem>>, vector<16x128xf32>
    %1 = arith.truncf %0 : vector<16x128xf32> to vector<16x128xbf16>
    %c0_1 = arith.constant 0 : index
    %c0_2 = arith.constant 0 : index
    %2 = vector.load %arg2[%c0_1, %c0_2] : memref<128x128xbf16, #tpu.memory_space<vmem>>, vector<128x128xbf16>
    %cst = arith.constant dense<0.000000e+00> : vector<16x128xf32>
    %3 = tpu.matmul %1, %2, %cst {dimension_numbers = #tpu.dot_dimension_numbers<[1], [0], [0], [1], [0, 0, 1, 1], [], []>} : vector<16x128xbf16>, vector<128x128xbf16>, vector<16x128xf32> -> vector<16x128xf32>
    %c0_3 = arith.constant 0 : index
    %c0_4 = arith.constant 0 : index
    %4 = vector.load %arg3[%c0_3, %c0_4] : memref<1x128xf32, #tpu.memory_space<vmem>>, vector<1x128xf32>
    %5 = vector.broadcast %4 : vector<1x128xf32> to vector<16x128xf32>
    %6 = arith.addf %3, %5 : vector<16x128xf32>
    %cst_5 = arith.constant 5.000000e-01 : f32
    %7 = vector.broadcast %cst_5 : f32 to vector<16x128xf32>
    %8 = arith.mulf %7, %6 : vector<16x128xf32>
    %cst_6 = arith.constant 0.707106769 : f32
    %9 = vector.broadcast %cst_6 : f32 to vector<16x128xf32>
    %10 = arith.mulf %6, %9 : vector<16x128xf32>
    %11 = math.erf %10 : vector<16x128xf32>
    %cst_7 = arith.constant 1.000000e+00 : f32
    %12 = vector.broadcast %cst_7 : f32 to vector<16x128xf32>
    %13 = arith.addf %12, %11 : vector<16x128xf32>
    %14 = arith.mulf %8, %13 : vector<16x128xf32>
    %15 = arith.truncf %14 : vector<16x128xf32> to vector<16x128xbf16>
    %c0_8 = arith.constant 0 : index
    %c0_9 = arith.constant 0 : index
    %16 = vector.load %arg4[%c0_8, %c0_9] : memref<128x128xbf16, #tpu.memory_space<vmem>>, vector<128x128xbf16>
    %cst_10 = arith.constant dense<0.000000e+00> : vector<16x128xf32>
    %17 = tpu.matmul %15, %16, %cst_10 {dimension_numbers = #tpu.dot_dimension_numbers<[1], [0], [0], [1], [0, 0, 1, 1], [], []>} : vector<16x128xbf16>, vector<128x128xbf16>, vector<16x128xf32> -> vector<16x128xf32>
    %c0_11 = arith.constant 0 : index
    %c0_12 = arith.constant 0 : index
    %18 = vector.load %arg5[%c0_11, %c0_12] : memref<1x128xf32, #tpu.memory_space<vmem>>, vector<1x128xf32>
    %19 = vector.broadcast %18 : vector<1x128xf32> to vector<16x128xf32>
    %20 = arith.addf %17, %19 : vector<16x128xf32>
    %cst_13 = arith.constant 5.000000e-01 : f32
    %21 = vector.broadcast %cst_13 : f32 to vector<16x128xf32>
    %22 = arith.mulf %21, %20 : vector<16x128xf32>
    %cst_14 = arith.constant 0.707106769 : f32
    %23 = vector.broadcast %cst_14 : f32 to vector<16x128xf32>
    %24 = arith.mulf %20, %23 : vector<16x128xf32>
    %25 = math.erf %24 : vector<16x128xf32>
    %cst_15 = arith.constant 1.000000e+00 : f32
    %26 = vector.broadcast %cst_15 : f32 to vector<16x128xf32>
    %27 = arith.addf %26, %25 : vector<16x128xf32>
    %28 = arith.mulf %22, %27 : vector<16x128xf32>
    %29 = arith.addf %28, %0 : vector<16x128xf32>
    %c0_16 = arith.constant 0 : index
    %c0_17 = arith.constant 0 : index
    %30 = vector.load %arg6[%c0_16, %c0_17] : memref<16x128xf32, #tpu.memory_space<vmem>>, vector<16x128xf32>
    tpu.vector_store %arg6[%c0_16, %c0_17], %29 {strides = array<i32>} : memref<16x128xf32, #tpu.memory_space<vmem>>, vector<16x128xf32>,
    return
  }
  func.func @transform_0(%arg0: i32) -> (i32, i32) {
    %c0_i32 = arith.constant 0 : i32
    %c0_i32_0 = arith.constant 0 : i32
    return %arg0, %c0_i32 : i32, i32
  }
  func.func @transform_1(%arg0: i32) -> (i32, i32) {
    %c0_i32 = arith.constant 0 : i32
    %c0_i32_0 = arith.constant 0 : i32
    %c0_i32_1 = arith.constant 0 : i32
    return %c0_i32, %c0_i32_0 : i32, i32
  }
  func.func @transform_2(%arg0: i32) -> (i32, i32) {
    %c0_i32 = arith.constant 0 : i32
    %c0_i32_0 = arith.constant 0 : i32
    %c0_i32_1 = arith.constant 0 : i32
    return %c0_i32, %c0_i32_0 : i32, i32
  }
  func.func @transform_3(%arg0: i32) -> (i32, i32) {
    %c0_i32 = arith.constant 0 : i32
    %c0_i32_0 = arith.constant 0 : i32
    %c0_i32_1 = arith.constant 0 : i32
    return %c0_i32, %c0_i32_0 : i32, i32
  }
  func.func @transform_4(%arg0: i32) -> (i32, i32) {
    %c0_i32 = arith.constant 0 : i32
    %c0_i32_0 = arith.constant 0 : i32
    %c0_i32_1 = arith.constant 0 : i32
    return %c0_i32, %c0_i32_0 : i32, i32
  }
  func.func @transform_5(%arg0: i32) -> (i32, i32) {
    %c0_i32 = arith.constant 0 : i32
    %c0_i32_0 = arith.constant 0 : i32
    return %arg0, %c0_i32 : i32, i32
  }
}

</mosaic_0001>

<bundles_post_ra>
// kernel: tpu_custom_call.1
= control target key start
LH: loop header
LB: loop body
LE: loop exit
PB: predicated region body
PF: predicated region fallthrough
CT: control target
= control target key end

     0   :  { %10 = vsyncpa [#allocation3], 0  ;;  %s651_s0 = inlined_call_operand.hbm [shape: f32[16,128], index: 0, kind: input, shape index: {}]   ;;  %s652_s1 = inlined_call_operand.hbm [shape: bf16[128,128], index: 1, kind: input, shape index: {}]   ;;  %s653_s2 = inlined_call_operand.vmem [shape: f32[1,128], index: 2, kind: input, shape index: {}]   ;;  %s654_s3 = inlined_call_operand.hbm [shape: bf16[128,128], index: 3, kind: input, shape index: {}]   ;;  %s655_s4 = inlined_call_operand.vmem [shape: f32[1,128], index: 4, kind: input, shape index: {}]   ;;  %s656_s5 = inlined_call_operand.hbm [shape: f32[16,128], index: 5, kind: output, shape index: {}]  }
   0x1   :  { %11 = vsyncpa [#allocation6], 0 }
   0x2   :  { %12 = vsyncpa [#allocation4], 0  ;;  %s537_s18 = smov [#allocation5]   ;;  %s443_s22 = scalar_lea.hbm %s652_s1, 1024 }
   0x3   :  { %s30_s19 = sshll.u32 %s537_s18, 4  ;;  %p444_p0 = scmp.ne.s32.totalorder %s652_s1, %s443_s22  ;;  %s31_s19 = int_to_ptr.vmem [resolvable:$true] %s30_s19 }
   0x4   :  { %p447_p1 = scmp.lt.u32.totalorder %s443_s22, %s652_s1 }
   0x6   :  { %p449_p2 = pnand %p447_p1, %p444_p0 }
   0x8   :  { %452 = shalt.err (!%p449_p2)
}
   0x9   :  { %s453_s27 = scalar_lea.vmem %s31_s19, 1024  ;;  %p458_p4 = scmp.lt.s32.totalorder %s31_s19, %s31_s19 }
   0xa   :  { %p454_p3 = scmp.ne.s32.totalorder %s31_s19, %s453_s27  ;;  %p459_p5 = scmp.lt.s32.totalorder %s453_s27, %s453_s27 }
   0xc   :  { %p460_p6 = por %p459_p5, %p458_p4 }
   0xe   :  { %p461_p7 = pnand %p460_p6, %p454_p3 }
  0x10   :  { %464 = shalt.err (!%p461_p7)
}
  0x11   :  { %s538_s28 = smov 64   ;;  %s539_s29 = smov 4  }
  0x12   :  { %36 = dma.hbm_to_vmem [thread:$0]  %s652_s1, 1024, %s31_s19, [#allocation6], %s538_s28, %s538_s28, %s539_s29  }
  0x13   :  { %s540_s7 = smov [#allocation2]   ;;  %s465_s11 = scalar_lea.hbm %s651_s0, 256 }
  0x14   :  { %s18_s8 = sshll.u32 %s540_s7, 4  ;;  %p466_p8 = scmp.ne.s32.totalorder %s651_s0, %s465_s11  ;;  %s19_s8 = int_to_ptr.vmem [resolvable:$true] %s18_s8 }
  0x15   :  { %p469_p9 = scmp.lt.u32.totalorder %s465_s11, %s651_s0 }
  0x17   :  { %p471_p10 = pnand %p469_p9, %p466_p8 }
  0x19   :  { %474 = shalt.err (!%p471_p10)
}
  0x1a   :  { %s475_s16 = scalar_lea.vmem %s19_s8, 256  ;;  %p480_p12 = scmp.lt.s32.totalorder %s19_s8, %s19_s8 }
  0x1b   :  { %p476_p11 = scmp.ne.s32.totalorder %s19_s8, %s475_s16  ;;  %p481_p13 = scmp.lt.s32.totalorder %s475_s16, %s475_s16 }
  0x1d   :  { %p482_p0 = por %p481_p13, %p480_p12 }
  0x1f   :  { %p483_p1 = pnand %p482_p0, %p476_p11 }
  0x21   :  { %486 = shalt.err (!%p483_p1)
}
  0x22   :  { %s541_s1 = smov 128   ;;  %s542_s17 = smov 8  }
  0x23   :  { %24 = dma.hbm_to_vmem [thread:$0]  %s651_s0, 256, %s19_s8, [#allocation3], %s541_s1, %s541_s1, %s542_s17  }
  0x24   :  { %s543_s20 = smov [#allocation7]   ;;  %s487_s24 = scalar_lea.hbm %s654_s3, 1024 }
  0x25   :  { %s44_s21 = sshll.u32 %s543_s20, 4  ;;  %p488_p2 = scmp.ne.s32.totalorder %s654_s3, %s487_s24  ;;  %s45_s21 = int_to_ptr.vmem [resolvable:$true] %s44_s21 }
  0x26   :  { %p491_p3 = scmp.lt.u32.totalorder %s487_s24, %s654_s3 }
  0x28   :  { %p493_p4 = pnand %p491_p3, %p488_p2 }
  0x2a   :  { %496 = shalt.err (!%p493_p4)
}
  0x2b   :  { %s497_s6 = scalar_lea.vmem %s45_s21, 1024  ;;  %p502_p6 = scmp.lt.s32.totalorder %s45_s21, %s45_s21 }
  0x2c   :  { %p498_p5 = scmp.ne.s32.totalorder %s45_s21, %s497_s6  ;;  %p503_p7 = scmp.lt.s32.totalorder %s497_s6, %s497_s6 }
  0x2e   :  { %p504_p8 = por %p503_p7, %p502_p6 }
  0x30   :  { %p505_p9 = pnand %p504_p8, %p498_p5 }
  0x32   :  { %508 = shalt.err (!%p505_p9)
}
  0x33   :  { %50 = dma.hbm_to_vmem [thread:$0]  %s654_s3, 1024, %s45_s21, [#allocation6], %s538_s28, %s538_s28, %s539_s29  }
  0x34   :  { %531 = dma.done.wait [#allocation3], 256  }
  0x35   :  { %532 = vsyncadd [#allocation3], 4294967040 }
  0x36   :  { %533 = dma.done.wait [#allocation6], 2048  }
  0x37   :  { %534 = vsyncadd [#allocation6], 4294965248  ;;  %v544_v0 = vmov 0.0   ;;  %vm545_vm0 = vmmov 0   ;;  %v419_v1 = vld [vmem:[#allocation5] sm:$0xff]   ;;  %v420_v2 = vld [vmem:[#allocation5 + $0x8] sm:$0xff]  }
  0x38   :  { %369 = vmatprep.subr.bf16.mxu0 %v544_v0  ;;  %385 = vmatprep.mubr.msk.bf16.mxu0 %vm545_vm0, %v544_v0  ;;  %v421_v3 = vld [vmem:[#allocation5 + $0x10] sm:$0xff]   ;;  %v427_v4 = vld [vmem:[#allocation7] sm:$0xff]   ;;  %v422_v5 = vld [vmem:[#allocation5 + $0x18] sm:$0xff]   ;;  %s546_s8 = smov [#allocation8]  }
  0x39   :  { %389 = vmatprep.subr.bf16.mxu1 %v544_v0  ;;  %405 = vmatprep.mubr.msk.bf16.mxu1 %vm545_vm0, %v544_v0  ;;  %v428_v6 = vld [vmem:[#allocation7 + $0x8] sm:$0xff]   ;;  %v423_v7 = vld [vmem:[#allocation5 + $0x20] sm:$0xff]   ;;  %v425_v9 = vld [vmem:[#allocation5 + $0x30] sm:$0xff]   ;;  %s320_s9 = sshll.u32 %s546_s8, 4  ;;  %s321_s9 = int_to_ptr.vmem [resolvable:$true] %s320_s9 }
  0x3a   :  { %370 = vmatpush3.bf16.msra.mxu0 %v419_v1  ;;  %390 = vmatpush3.bf16.msra.mxu1 %v427_v4  ;;  %v424_v8 = vld [vmem:[#allocation5 + $0x28] sm:$0xff]   ;;  %v426_v10 = vld [vmem:[#allocation5 + $0x38] sm:$0xff]   ;;  %v622_v11 = vld [vmem:[#allocation2] sm:$0xff]  ;;  %p514_p11 = scmp.lt.s32.totalorder %s321_s9, %s321_s9 }
  0x3b   :  { %371 = vmatprep.subr.bf16.mxu0 %v544_v0  ;;  %391 = vmatprep.subr.bf16.mxu1 %v544_v0  ;;  %v624_v12 = vld [vmem:[#allocation2 + $0x8] sm:$0xff]  ;;  %v429_v14 = vld [vmem:[#allocation7 + $0x10] sm:$0xff]   ;;  %v431_v16 = vld [vmem:[#allocation7 + $0x20] sm:$0xff]  }
  0x3c   :  { %v65_v13 = vpack.c.bf16 %v624_v12, %v622_v11  ;;  %v430_v15 = vld [vmem:[#allocation7 + $0x18] sm:$0xff]   ;;  %v432_v17 = vld [vmem:[#allocation7 + $0x28] sm:$0xff]   ;;  %v433_v18 = vld [vmem:[#allocation7 + $0x30] sm:$0xff]  }
  0x3d   :  { %v434_v19 = vld [vmem:[#allocation7 + $0x38] sm:$0xff]   ;;  %v333_v20 = vld [vmem:[%s653_s2] ss:$0 sm:$0xff] }
  0x3e   :  { %372 = vmatpush3.bf16.msra.mxu0 %v420_v2  ;;  %392 = vmatpush3.bf16.msra.mxu1 %v428_v6  ;;  %v342_v38 = vld [vmem:[%s655_s4] ss:$0 sm:$0xff]  ;;  %s509_s4 = scalar_lea.vmem %s321_s9, 256 }
  0x3f   :  { %373 = vmatprep.subr.bf16.mxu0 %v544_v0  ;;  %393 = vmatprep.subr.bf16.mxu1 %v544_v0  ;;  %p510_p10 = scmp.ne.s32.totalorder %s321_s9, %s509_s4  ;;  %p515_p12 = scmp.lt.s32.totalorder %s509_s4, %s509_s4 }
  0x41   :  { %p516_p13 = por %p515_p12, %p514_p11 }
  0x42   :  { %374 = vmatpush3.bf16.msra.mxu0 %v421_v3  ;;  %394 = vmatpush3.bf16.msra.mxu1 %v429_v14 }
  0x43   :  { %375 = vmatprep.subr.bf16.mxu0 %v544_v0  ;;  %395 = vmatprep.subr.bf16.mxu1 %v544_v0  ;;  %p517_p0 = pnand %p516_p13, %p510_p10 }
  0x46   :  { %376 = vmatpush3.bf16.msra.mxu0 %v422_v5  ;;  %396 = vmatpush3.bf16.msra.mxu1 %v430_v15 }
  0x47   :  { %377 = vmatprep.subr.bf16.mxu0 %v544_v0  ;;  %397 = vmatprep.subr.bf16.mxu1 %v544_v0 }
  0x4a   :  { %378 = vmatpush3.bf16.msra.mxu0 %v423_v7  ;;  %398 = vmatpush3.bf16.msra.mxu1 %v431_v16 }
  0x4b   :  { %379 = vmatprep.subr.bf16.mxu0 %v544_v0  ;;  %399 = vmatprep.subr.bf16.mxu1 %v544_v0 }
  0x4e   :  { %380 = vmatpush3.bf16.msra.mxu0 %v424_v8  ;;  %400 = vmatpush3.bf16.msra.mxu1 %v432_v17 }
  0x4f   :  { %381 = vmatprep.subr.bf16.mxu0 %v544_v0  ;;  %401 = vmatprep.subr.bf16.mxu1 %v544_v0 }
  0x52   :  { %382 = vmatpush3.bf16.msra.mxu0 %v425_v9  ;;  %402 = vmatpush3.bf16.msra.mxu1 %v433_v18 }
  0x53   :  { %383 = vmatprep.subr.bf16.mxu0 %v544_v0  ;;  %403 = vmatprep.subr.bf16.mxu1 %v544_v0 }
  0x56   :  { %384 = vmatpush3.bf16.msra.mxu0 %v426_v10  ;;  %404 = vmatpush3.bf16.msra.mxu1 %v434_v19 }
  0x59   :  { %386 = vmatmul.mubr.bf16.vlgmr.msra.gmra.mrb[0].mxu0 %v65_v13 }
 0x12c   :  { %v171_v21 = vpop.f32.mrb[0].mxu0 }
 0x12d   :  { %v172_v22 = vadd.f32 %v333_v20, %v171_v21  ;;  %v387_v23 = vpop.f32.mrb[1].mxu0 }
 0x12e   :  { %v174_v24 = vpop.f32.mrb[2].mxu0 }
 0x12f   :  { %v180_v25 = vmul.f32 0.70710677, %v172_v22  ;;  %v175_v26 = vadd.f32 %v333_v20, %v174_v24  ;;  %v388_v27 = vpop.f32.mrb[3].mxu0  ;;  %v178_v32 = vmul.f32 0.5, %v172_v22 }
 0x131   :  { %435 = verf.f32 %v180_v25  ;;  %v181_v28 = vmul.f32 0.70710677, %v175_v26  ;;  %v179_v33 = vmul.f32 0.5, %v175_v26 }
 0x133   :  { %437 = verf.f32 %v181_v28 }
 0x13b   :  { %v436_v29 = vpop.eup %435 }
 0x13c   :  { %v184_v30 = vadd.f32 1.0, %v436_v29 }
 0x13d   :  { %v438_v31 = vpop.eup %437 }
 0x13e   :  { %v185_v34 = vadd.f32 1.0, %v438_v31  ;;  %v186_v35 = vmul.f32 %v184_v30, %v178_v32 }
 0x140   :  { %v187_v36 = vmul.f32 %v185_v34, %v179_v33 }
 0x142   :  { %v188_v37 = vpack.c.bf16 %v187_v36, %v186_v35 }
 0x144   :  { %406 = vmatmul.mubr.bf16.vlgmr.msra.gmra.mrb[0].mxu1 %v188_v37 }
 0x217   :  { %v294_v39 = vpop.f32.mrb[0].mxu1 }
 0x218   :  { %v295_v40 = vadd.f32 %v342_v38, %v294_v39  ;;  %v407_v41 = vpop.f32.mrb[1].mxu1 }
 0x219   :  { %v297_v42 = vpop.f32.mrb[2].mxu1 }
 0x21a   :  { %v303_v43 = vmul.f32 0.70710677, %v295_v40  ;;  %v298_v44 = vadd.f32 %v342_v38, %v297_v42  ;;  %v408_v45 = vpop.f32.mrb[3].mxu1  ;;  %v301_v48 = vmul.f32 0.5, %v295_v40 }
 0x21c   :  { %439 = verf.f32 %v303_v43  ;;  %v304_v46 = vmul.f32 0.70710677, %v298_v44  ;;  %v302_v52 = vmul.f32 0.5, %v298_v44 }
 0x21e   :  { %441 = verf.f32 %v304_v46 }
 0x226   :  { %v440_v47 = vpop.eup %439 }
 0x227   :  { %v307_v49 = vadd.f32 1.0, %v440_v47 }
 0x228   :  { %v442_v50 = vpop.eup %441 }
 0x229   :  { %v309_v51 = vmul.f32 %v307_v49, %v301_v48  ;;  %v308_v53 = vadd.f32 1.0, %v442_v50 }
 0x22b   :  { %v310_v54 = vmul.f32 %v308_v53, %v302_v52  ;;  %v311_v55 = vadd.f32 %v309_v51, %v622_v11 }
 0x22d   :  { %v312_v56 = vadd.f32 %v310_v54, %v624_v12  ;;  %313 = vst [vmem:[#allocation8] sm:$0xff] %v311_v55 }
 0x22f   :  { %314 = vst [vmem:[#allocation8 + $0x8] sm:$0xff] %v312_v56 }
 0x230   :  { %520 = shalt.err (!%p517_p0)
}
 0x231   :  { %s521_s12 = scalar_lea.hbm %s656_s5, 256 }
 0x232   :  { %p522_p1 = scmp.ne.s32.totalorder %s656_s5, %s521_s12  ;;  %p525_p2 = scmp.lt.u32.totalorder %s521_s12, %s656_s5 }
 0x234   :  { %p527_p3 = pnand %p525_p2, %p522_p1 }
 0x236   :  { %530 = shalt.err (!%p527_p3)
}
 0x237   :  { %326 = dma.vmem_to_hbm [thread:$0]  %s321_s9, 256, %s656_s5, [#allocation4], %s541_s1, %s541_s1, %s542_s17  }
 0x238   :  { %535 = dma.done.wait [#allocation4], 256  }
 0x239   :  { %536 = vsyncadd [#allocation4], 4294967040 }
 0x23a   :  { %330 = vsyncpa [#allocation3], 1 }
 0x23b   :  { %331 = vsyncpa [#allocation6], 1 }
 0x23c   :  { %332 = vsyncpa [#allocation4], 1 }

</bundles_post_ra>
